<compile_context>
chip_gen: v5e
topology: v5e:2x2
jax: 0.10.0
libtpu: 0.0.40
codegen_flags: <defaults>
</compile_context>

<pallas_src>
import jax
import jax.numpy as jnp
from jax import lax
from jax.experimental import pallas as pl
from jax.experimental.pallas import tpu as pltpu


def _cutout_kernel(params_ref, img_ref, out_ref):
    """Copy this row tile, zeroing the cutout rectangle.

    params_ref: SMEM int32[5] = (y_start, y_cut, x_start, x_cut, first_row_tile)
    img_ref / out_ref: VMEM (C, TH, W) tiles.
    """
    _, th, w = img_ref.shape
    y_start = params_ref[0]
    y_cut = params_ref[1]
    x_start = params_ref[2]
    x_cut = params_ref[3]
    # Global row index of the first row of this tile.
    row0 = (params_ref[4] + pl.program_id(0)) * th

    # 2D mask, broadcast over channels: 1/C of the iota + compare + AND work
    # of a naive 3D version, and no int32 (C, TH, W) temporaries.
    rows = row0 + lax.broadcasted_iota(jnp.int32, (th, w), 0)
    cols = lax.broadcasted_iota(jnp.int32, (th, w), 1)
    in_cut = (
        (rows >= y_start)
        & (rows < y_start + y_cut)
        & (cols >= x_start)
        & (cols < x_start + x_cut)
    )

    img = img_ref[...]
    out_ref[...] = jnp.where(in_cut[None, :, :], jnp.zeros((), img.dtype), img)


def _pick_row_tile(c, h, w, dtype):
    """Largest row tile keeping in+out double buffers well under scoped VMEM."""
    itemsize = jnp.dtype(dtype).itemsize
    sublane = max(8, 32 // itemsize)  # 8 for f32, 16 for bf16, 32 for int8
    budget_bytes = 2 * 1024 * 1024    # per block; x4 buffers ~ 8 MiB (safe v5e/v6e/v7x)
    th = budget_bytes // max(1, c * w * itemsize)
    th = max(sublane, (min(th, 512) // sublane) * sublane)
    if th >= h:
        return h  # full extent is always a legal block dim
    return th


def random_cutout(img, key, size=(16, 16), min_cutout=0.2, max_cutout=0.8,
                  *, row_tile=None, use_pallas=True):
    """JAX/Pallas port of RandomCutOut.forward.

    img: (C, H, W) array.  Returns a new array with a random rectangle zeroed.
    """
    h, w = size
    c = img.shape[0]
    assert img.shape[1] == h and img.shape[2] == w, (img.shape, size)

    # Match the PyTorch __init__ exactly.  torch.randint uses an exclusive
    # upper bound, same as jax.random.randint, so the distributions match.
    min_c = (max(1, int(min_cutout * h)), max(1, int(min_cutout * w)))
    max_c = (int(max_cutout * h), int(max_cutout * w))
    # Guard degenerate sizes where min >= max (torch would raise; clamp instead).
    max_c = (max(max_c[0], min_c[0] + 1), max(max_c[1], min_c[1] + 1))

    k1, k2, k3, k4 = jax.random.split(key, 4)
    # NOTE: the original module uses min_cutout[0] as the lower bound for BOTH
    # the y and x cutout sizes -- reproduced faithfully.
    y_cut = jax.random.randint(k1, (), min_c[0], max_c[0], dtype=jnp.int32)
    x_cut = jax.random.randint(k2, (), min_c[0], max_c[1], dtype=jnp.int32)
    y_start = jax.random.randint(k3, (), 0, h - y_cut, dtype=jnp.int32)
    x_start = jax.random.randint(k4, (), 0, w - x_cut, dtype=jnp.int32)

    if not use_pallas:
        # Tiny-image fallback: a fused XLA select beats Pallas launch overhead.
        rows = jnp.arange(h, dtype=jnp.int32)[:, None]
        cols = jnp.arange(w, dtype=jnp.int32)[None, :]
        in_cut = ((rows >= y_start) & (rows < y_start + y_cut)
                  & (cols >= x_start) & (cols < x_start + x_cut))
        return jnp.where(in_cut[None, :, :], jnp.zeros((), img.dtype), img)

    th = row_tile if row_tile is not None else _pick_row_tile(c, h, w, img.dtype)
    th = min(th, h)
    n_row_tiles = pl.cdiv(h, th)
    # Only visit row tiles that can contain the cutout: a rectangle of at most
    # max_c[0] rows spans at most cdiv(max_c[0], th) + 1 consecutive tiles.
    # Clamp the starting tile so the static-length window stays in range
    # (shifting the window up still covers the cutout, which ends before H).
    grid_len = min(pl.cdiv(max_c[0], th) + 1, n_row_tiles)
    first_tile = jnp.minimum(
        y_start // th, jnp.int32(n_row_tiles - grid_len)
    ).astype(jnp.int32)

    params = jnp.stack([y_start, y_cut, x_start, x_cut, first_tile]).astype(jnp.int32)

    spec = pl.BlockSpec((c, th, w), lambda i, p: (0, p[4] + i, 0))
    out = pl.pallas_call(
        _cutout_kernel,
        out_shape=jax.ShapeDtypeStruct(img.shape, img.dtype),
        grid_spec=pltpu.PrefetchScalarGridSpec(
            num_scalar_prefetch=1,
            grid=(grid_len,),
            in_specs=[spec],
            out_specs=spec,
        ),
        # In-place style update: rows outside the visited window keep their
        # original values through the alias (input 1 == img aliases output 0).
        input_output_aliases={1: 0},
        compiler_params=pltpu.CompilerParams(
            # Independent row tiles: shard across TensorCores on multi-TC chips.
            dimension_semantics=("parallel",),
        ),
    )(params, img)
    return out


# Jitted entry point used by the demo: static config args, image donated so the
# in-place alias inside pallas_call is honored end-to-end (no extra HBM copy),
# matching the PyTorch module's in-place mutation of img.
_random_cutout_jit = jax.jit(
    random_cutout,
    static_argnames=("size", "min_cutout", "max_cutout", "row_tile", "use_pallas"),
    donate_argnums=(0,),
)


def _check(name, original, out):
    zero_mask = (out == 0.0)
    assert bool(zero_mask.any()), f"{name}: expected a cutout region of zeros"
    assert bool(jnp.all(jnp.where(zero_mask, True, out == original))), (
        f"{name}: non-cutout pixels must be unchanged")
    assert bool(jnp.all(zero_mask == zero_mask[0:1])), (
        f"{name}: cutout must span all channels")


if __name__ == "__main__":
    root = jax.random.PRNGKey(0)
    k_img_a, k_aug_a, k_img_b, k_aug_b = jax.random.split(root, 4)

    # Case A: the module's default size; whole image fits one block.
    C, H, W = 4, 16, 16
    img_a = jax.random.normal(k_img_a, (C, H, W), dtype=jnp.float32)
    ref_a = jnp.array(img_a, copy=True)  # copy before donation (img_a is consumed)
    out_a = jax.block_until_ready(_random_cutout_jit(img_a, k_aug_a, size=(H, W)))
    _check("small", ref_a, out_a)

    # Case B: larger image with a forced small row tile to exercise the
    # restricted, data-dependent row-tile grid and the in-place aliasing.
    C2, H2, W2 = 3, 256, 256
    img_b = jax.random.normal(k_img_b, (C2, H2, W2), dtype=jnp.float32)
    ref_b = jnp.array(img_b, copy=True)  # copy before donation (img_b is consumed)
    out_b = jax.block_until_ready(
        _random_cutout_jit(img_b, k_aug_b, size=(H2, W2), max_cutout=0.4, row_tile=64))
    _check("large", ref_b, out_b)

    print("KERNEL_OK")
</pallas_src>

<mosaic_0001>
module attributes {stable_mosaic.version = 11 : i64} {
  func.func @_cutout_kernel(%arg0: i32, %arg1: memref<5xi32, #tpu.memory_space<smem>>, %arg2: memref<4x16x16xf32, #tpu.memory_space<vmem>>, %arg3: memref<4x16x16xf32, #tpu.memory_space<vmem>>) attributes {dimension_semantics = [#tpu.dimension_semantics<parallel>], iteration_bounds = array<i64: 1>, scalar_prefetch = 1 : i64, scratch_operands = 0 : i64, tpu.core_type = #tpu.core_type<tc>, window_params = [{transform_indices = @transform_0, window_bounds = array<i64: 4, 16, 16>}, {transform_indices = @transform_1, window_bounds = array<i64: 4, 16, 16>}]} {
    %c0 = arith.constant 0 : index
    %0 = memref.load %arg1[%c0] : memref<5xi32, #tpu.memory_space<smem>>
    %c1 = arith.constant 1 : index
    %1 = memref.load %arg1[%c1] : memref<5xi32, #tpu.memory_space<smem>>
    %c2 = arith.constant 2 : index
    %2 = memref.load %arg1[%c2] : memref<5xi32, #tpu.memory_space<smem>>
    %c3 = arith.constant 3 : index
    %3 = memref.load %arg1[%c3] : memref<5xi32, #tpu.memory_space<smem>>
    %c4 = arith.constant 4 : index
    %4 = memref.load %arg1[%c4] : memref<5xi32, #tpu.memory_space<smem>>
    %5 = arith.addi %4, %arg0 : i32
    %c16_i32 = arith.constant 16 : i32
    %6 = arith.muli %5, %c16_i32 : i32
    %7 = tpu.iota {dimensions = array<i32: 0>} : vector<16x16xi32>
    %8 = vector.broadcast %6 : i32 to vector<16x16xi32>
    %9 = arith.addi %8, %7 : vector<16x16xi32>
    %10 = tpu.iota {dimensions = array<i32: 1>} : vector<16x16xi32>
    %11 = vector.broadcast %0 : i32 to vector<16x16xi32>
    %12 = arith.cmpi sge, %9, %11 : vector<16x16xi32>
    %13 = arith.addi %0, %1 : i32
    %14 = vector.broadcast %13 : i32 to vector<16x16xi32>
    %15 = arith.cmpi slt, %9, %14 : vector<16x16xi32>
    %16 = arith.andi %12, %15 : vector<16x16xi1>
    %17 = vector.broadcast %2 : i32 to vector<16x16xi32>
    %18 = arith.cmpi sge, %10, %17 : vector<16x16xi32>
    %19 = arith.andi %16, %18 : vector<16x16xi1>
    %20 = arith.addi %2, %3 : i32
    %21 = vector.broadcast %20 : i32 to vector<16x16xi32>
    %22 = arith.cmpi slt, %10, %21 : vector<16x16xi32>
    %23 = arith.andi %19, %22 : vector<16x16xi1>
    %c0_0 = arith.constant 0 : index
    %c0_1 = arith.constant 0 : index
    %c0_2 = arith.constant 0 : index
    %24 = vector.load %arg2[%c0_0, %c0_1, %c0_2] : memref<4x16x16xf32, #tpu.memory_space<vmem>>, vector<4x16x16xf32>
    %25 = vector.shape_cast %23 : vector<16x16xi1> to vector<1x16x16xi1>
    %cst = arith.constant 0.000000e+00 : f32
    %26 = vector.shape_cast %25 : vector<1x16x16xi1> to vector<1x16x16xi1>
    %27 = vector.broadcast %26 : vector<1x16x16xi1> to vector<4x16x16xi1>
    %28 = vector.broadcast %cst : f32 to vector<4x16x16xf32>
    %29 = arith.select %27, %28, %24 : vector<4x16x16xi1>, vector<4x16x16xf32>
    %c0_3 = arith.constant 0 : index
    %c0_4 = arith.constant 0 : index
    %c0_5 = arith.constant 0 : index
    %30 = vector.load %arg3[%c0_3, %c0_4, %c0_5] : memref<4x16x16xf32, #tpu.memory_space<vmem>>, vector<4x16x16xf32>
    tpu.vector_store %arg3[%c0_3, %c0_4, %c0_5], %29 {strides = array<i32>} : memref<4x16x16xf32, #tpu.memory_space<vmem>>, vector<4x16x16xf32>,
    return
  }
  func.func @transform_0(%arg0: i32, %arg1: memref<5xi32, #tpu.memory_space<smem>>) -> (i32, i32, i32) {
    %c4 = arith.constant 4 : index
    %0 = memref.load %arg1[%c4] : memref<5xi32, #tpu.memory_space<smem>>
    %1 = arith.addi %0, %arg0 : i32
    %c0_i32 = arith.constant 0 : i32
    %c0_i32_0 = arith.constant 0 : i32
    %c0_i32_1 = arith.constant 0 : i32
    return %c0_i32, %1, %c0_i32_0 : i32, i32, i32
  }
  func.func @transform_1(%arg0: i32, %arg1: memref<5xi32, #tpu.memory_space<smem>>) -> (i32, i32, i32) {
    %c4 = arith.constant 4 : index
    %0 = memref.load %arg1[%c4] : memref<5xi32, #tpu.memory_space<smem>>
    %1 = arith.addi %0, %arg0 : i32
    %c0_i32 = arith.constant 0 : i32
    %c0_i32_0 = arith.constant 0 : i32
    %c0_i32_1 = arith.constant 0 : i32
    return %c0_i32, %1, %c0_i32_0 : i32, i32, i32
  }
}

</mosaic_0001>

<bundles_post_ra>
// kernel: random_cutout.3
= control target key start
LH: loop header
LB: loop body
LE: loop exit
PB: predicated region body
PF: predicated region fallthrough
CT: control target
= control target key end

     0   :  { %s219_s12 = smov [#allocation3]   ;;  %s311_s0 = inlined_call_operand.vmem [shape: s32[5], index: 0, kind: input, shape index: {}]   ;;  %s312_s1 = inlined_call_operand.hbm [shape: f32[4,16,16], index: 1, kind: input, shape index: {}, may-alias: {1,2}]   ;;  %s313_s2 = inlined_call_operand.hbm [shape: f32[4,16,16], index: 2, kind: output, shape index: {}, may-alias: {1,2}]  }
   0x1   :  { %s8_s11 = sshll.u32 %s311_s0, 4  ;;  %s9_s11 = int_to_ptr.vmem [resolvable:$true] %s8_s11 }
   0x2   :  { %11 = dma.vmem_to_smem %s9_s11, 16, %s219_s12, [#allocation2] }
   0x3   :  { %213 = dma.done.wait [#allocation2], 16 }
   0x4   :  { %214 = vsyncadd [#allocation2], 4294967280 }
   0x5   :  { %14 = sfence }
   0x6   :  { %15 = vsyncpa [#allocation5], 0 }
   0x7   :  { %16 = vsyncpa [#allocation6], 0  ;;  %s135_s13 = sld [smem:[#allocation3 + $0x4]]  ;;  %s220_s14 = smov [#allocation4]  }
   0x8   :  { %s28_s15 = sshll.u32 %s220_s14, 4  ;;  %s169_s24 = scalar_lea.hbm %s312_s1, 64  ;;  %s29_s15 = int_to_ptr.vmem [resolvable:$true] %s28_s15 }
   0xd   :  { %s146_s16 = sshll.u32 %s135_s13, 4 }
   0xe   :  { %s25_s19 = scalar_lea.hbm %s312_s1, %s146_s16 }
   0xf   :  { %s26_s20 = sshll.u32 %s25_s19, 4  ;;  %s27_s20 = int_to_ptr.hbm [resolvable:$true] %s26_s20 }
  0x10   :  { %s165_s0 = sshra.s32 %s27_s20, 4  ;;  %s166_s0 = int_to_ptr.hbm [resolvable:$true] %s165_s0 }
  0x11   :  { %s167_s21 = scalar_lea.hbm %s166_s0, 64  ;;  %p170_p1 = scmp.lt.s32.totalorder %s166_s0, %s312_s1 }
  0x12   :  { %p168_p0 = scmp.ne.s32.totalorder %s166_s0, %s167_s21  ;;  %p171_p2 = scmp.lt.s32.totalorder %s169_s24, %s167_s21 }
  0x14   :  { %p172_p3 = por %p171_p2, %p170_p1 }
  0x16   :  { %p173_p4 = pnand %p172_p3, %p168_p0 }
  0x18   :  { %176 = shalt.err (!%p173_p4)
}
  0x19   :  { %s221_s27 = smov 128   ;;  %s222_s28 = smov 8  }
  0x1a   :  { %34 = dma.hbm_to_vmem [thread:$0]  %s27_s20, 1024, %s29_s15, [#allocation5], %s221_s27, %s221_s27, %s222_s28  }
  0x1b   :  { %215 = dma.done.wait [#allocation5], 1024  }
  0x1c   :  { %216 = vsyncadd [#allocation5], 4294966272  ;;  %s45_s29 = sld [smem:[#allocation3]]  ;;  %v52_v0 = vlaneseq  ;;  %v78_v12 = vld [vmem:[#allocation4] sm:$0xff]  ;;  %v80_v13 = vld [vmem:[#allocation4 + $0x10] sm:$0xff]  ;;  %vm98_vm8 = vcmask 130048  }
  0x1d   :  { %s138_s30 = sld [smem:[#allocation3 + $0x1]]  ;;  %v82_v14 = vld [vmem:[#allocation4 + $0x20] sm:$0xff]  ;;  %v79_v16 = vld [vmem:[#allocation4 + $0x8] sm:$0xff]  ;;  %v81_v19 = vld [vmem:[#allocation4 + $0x18] sm:$0xff]  ;;  %s223_s11 = smov [#allocation7]  }
  0x1e   :  { %s139_s3 = sld [smem:[#allocation3 + $0x2]]  ;;  %v53_v1 = vshrl.u32 %v52_v0, 7  ;;  %v59_v3 = vand.u32 127, %v52_v0  ;;  %v83_v21 = vld [vmem:[#allocation4 + $0x28] sm:$0xff]  ;;  %v84_v22 = vld [vmem:[#allocation4 + $0x30] sm:$0xff]  ;;  %v85_v24 = vld [vmem:[#allocation4 + $0x38] sm:$0xff] }
  0x1f   :  { %s140_s4 = sld [smem:[#allocation3 + $0x3]]  ;;  %s116_s12 = sshll.u32 %s223_s11, 4  ;;  %s117_s12 = int_to_ptr.vmem [resolvable:$true] %s116_s12 }
  0x20   :  { %s254_s5 = sld [smem:[#allocation3 + $0x4]]  ;;  %v54_v2 = vadd.s32 8, %v53_v1  ;;  %s205_s18 = scalar_lea.hbm %s313_s2, 64 }
  0x22   :  { %v60_v6 = vstv %s45_s29 }
  0x23   :  { %s63_s1 = sadd.s32 %s138_s30, %s45_s29 }
  0x24   :  { %v69_v4 = vstv %s139_s3  ;;  %v64_v7 = vstv %s63_s1 }
  0x25   :  { %s73_s6 = sadd.s32 %s140_s4, %s139_s3  ;;  %vm257_vm0 = vcmp.ge.s32.totalorder %v59_v3, %v69_v4 }
  0x26   :  { %s142_s7 = sshll.u32 %s254_s5, 4  ;;  %v74_v8 = vstv %s73_s6 }
  0x27   :  { %v55_v5 = vstv %s142_s7  ;;  %vm75_vm3 = vcmp.lt.s32.totalorder %v59_v3, %v74_v8  ;;  %s115_s10 = scalar_lea.hbm %s313_s2, %s142_s7 }
  0x28   :  { %v56_v9 = vadd.s32 %v55_v5, %v53_v1  ;;  %v57_v10 = vadd.s32 %v55_v5, %v54_v2  ;;  %s118_s13 = sshll.u32 %s115_s10, 4  ;;  %s119_s13 = int_to_ptr.hbm [resolvable:$true] %s118_s13 }
  0x29   :  { %s201_s14 = sshra.s32 %s119_s13, 4  ;;  %s202_s14 = int_to_ptr.hbm [resolvable:$true] %s201_s14 }
  0x2a   :  { %vm61_vm1 = vcmp.ge.s32.totalorder %v56_v9, %v60_v6  ;;  %vm65_vm2 = vcmp.lt.s32.totalorder %v56_v9, %v64_v7  ;;  %vm62_vm5 = vcmp.ge.s32.totalorder %v57_v10, %v60_v6  ;;  %vm66_vm6 = vcmp.lt.s32.totalorder %v57_v10, %v64_v7  ;;  %s203_s15 = scalar_lea.hbm %s202_s14, 64  ;;  %p206_p6 = scmp.lt.s32.totalorder %s202_s14, %s313_s2 }
  0x2b   :  { %vm67_vm4 = vmand %vm61_vm1, %vm65_vm2  ;;  %p204_p5 = scmp.ne.s32.totalorder %s202_s14, %s203_s15  ;;  %p207_p7 = scmp.lt.s32.totalorder %s205_s18, %s203_s15 }
  0x2c   :  { %vm71_vm7 = vmand %vm67_vm4, %vm257_vm0 }
  0x2d   :  { %vm264_vm9 = vmand %vm71_vm7, %vm75_vm3  ;;  %p208_p8 = por %p207_p7, %p206_p6 }
  0x2e   :  { %v90_v17 = vsel %vm264_vm9, 0.0, %v78_v12  ;;  %vm68_vm10 = vmand %vm62_vm5, %vm66_vm6  ;;  %v92_v18 = vsel %vm264_vm9, 0.0, %v80_v13  ;;  %v94_v20 = vsel %vm264_vm9, 0.0, %v82_v14  ;;  %v96_v28 = vsel %vm264_vm9, 0.0, %v84_v22 }
  0x2f   :  { %99 = vst.msk [vmem:[#allocation7] sm:$0xff] %vm98_vm8, %v90_v17  ;;  %vm72_vm11 = vmand %vm68_vm10, %vm257_vm0  ;;  %p209_p9 = pnand %p208_p8, %p204_p5 }
  0x30   :  { %vm281_vm12 = vmand %vm72_vm11, %vm75_vm3  ;;  %101 = vst.msk [vmem:[#allocation7 + $0x10] sm:$0xff] %vm98_vm8, %v92_v18 }
  0x31   :  { %v91_v25 = vsel %vm281_vm12, 0.0, %v79_v16  ;;  %v93_v26 = vsel %vm281_vm12, 0.0, %v81_v19  ;;  %103 = vst.msk [vmem:[#allocation7 + $0x20] sm:$0xff] %vm98_vm8, %v94_v20  ;;  %v95_v27 = vsel %vm281_vm12, 0.0, %v83_v21  ;;  %v97_v29 = vsel %vm281_vm12, 0.0, %v85_v24 }
  0x32   :  { %100 = vst.msk [vmem:[#allocation7 + $0x8] sm:$0xff] %vm98_vm8, %v91_v25 }
  0x33   :  { %102 = vst.msk [vmem:[#allocation7 + $0x18] sm:$0xff] %vm98_vm8, %v93_v26 }
  0x34   :  { %104 = vst.msk [vmem:[#allocation7 + $0x28] sm:$0xff] %vm98_vm8, %v95_v27 }
  0x35   :  { %105 = vst.msk [vmem:[#allocation7 + $0x30] sm:$0xff] %vm98_vm8, %v96_v28 }
  0x36   :  { %106 = vst.msk [vmem:[#allocation7 + $0x38] sm:$0xff] %vm98_vm8, %v97_v29 }
  0x37   :  { %212 = shalt.err (!%p209_p9)
}
  0x38   :  { %124 = dma.vmem_to_hbm [thread:$0]  %s117_s12, 1024, %s119_s13, [#allocation6], %s221_s27, %s221_s27, %s222_s28  }
  0x39   :  { %217 = dma.done.wait [#allocation6], 1024  }
  0x3a   :  { %218 = vsyncadd [#allocation6], 4294966272 }
  0x3b   :  { %129 = vsyncpa [#allocation5], 1 }
  0x3c   :  { %130 = vsyncpa [#allocation6], 1 }

</bundles_post_ra>
